<compile_context>
chip_gen: v5e
topology: v5e:2x2
jax: 0.10.0
libtpu: 0.0.40
codegen_flags: <defaults>
</compile_context>

<pallas_src>
import functools

import jax
import jax.numpy as jnp
from jax.experimental import pallas as pl
from jax.experimental.pallas import tpu as pltpu

LANE = 128


def _round_up(x: int, m: int) -> int:
    return (x + m - 1) // m * m


def _pad2(a, rows, cols):
    return jnp.pad(a, ((0, rows - a.shape[0]), (0, cols - a.shape[1])))


def make_cbow_kernel(num_layers: int):
    """Returns the fused kernel closed over the (static) number of hidden layers."""

    def kernel(tok_ref, len_ref, emb_ref, w_ref, b_ref, out_ref):
        # tok_ref: (B, S) int32       token ids (pad positions hold pad_idx)
        # len_ref: (B, 1) f32         true sequence lengths
        # emb_ref: (Vp, Dp) bf16      zero-padded embedding table (pad row = 0)
        # w_ref:   (L+1, Dp, Dp) bf16 stacked hidden + output weights
        # b_ref:   (L+1, 1, Dp) f32   stacked biases
        # out_ref: (B, Dp) f32        lane-dense output (wrapper slices)
        B, S = tok_ref.shape
        Vp = emb_ref.shape[0]

        tok = tok_ref[...]
        lane_ids = jax.lax.broadcasted_iota(jnp.int32, (1, Vp), 1)

        # Bag-of-words counts: S is small & static -> fully unrolled VPU
        # compare + int32 add; a single cast to bf16 afterwards.
        counts = jnp.zeros((B, Vp), jnp.int32)
        for s in range(S):
            counts = counts + (tok[:, s : s + 1] == lane_ids).astype(jnp.int32)

        # Gather + sum == one lane-dense MXU matmul against the table
        # (padding_idx row of the table is zero, so pad tokens contribute 0).
        x = jnp.dot(counts.astype(emb_ref.dtype), emb_ref[...],
                    preferred_element_type=jnp.float32)

        # Average by sequence length AFTER the matmul: B*Dp elements instead
        # of B*Vp, with the reciprocal on the EUP (approx path).
        inv_len = pl.reciprocal(len_ref[...], approx=True)       # (B, 1) f32
        x = jnp.maximum(x * inv_len, 0.0)                         # relu

        # Hidden MLP stack (dropout identity in eval mode). bf16 operands,
        # f32 accumulation, f32 bias/relu.
        for i in range(num_layers):
            w = w_ref[i]                                           # (Dp, Dp) bf16
            b = b_ref[i]                                           # (1, Dp)  f32
            x = jnp.maximum(
                jnp.dot(x.astype(w.dtype), w, preferred_element_type=jnp.float32) + b,
                0.0)

        # Output projection: unmasked lane-dense (B, Dp) store.
        w_out = w_ref[num_layers]
        b_out = b_ref[num_layers]
        out_ref[...] = jnp.dot(x.astype(w_out.dtype), w_out,
                               preferred_element_type=jnp.float32) + b_out

    return kernel


def init_params(key, *, embedding_dim, num_embeddings, hidden_size, num_outs,
                num_layers, pad_idx):
    """Deterministic synthetic f32 parameters matching the module's shapes."""
    keys = jax.random.split(key, 2 * (num_layers + 1) + 1)
    k_iter = iter(keys)

    emb = jax.random.normal(next(k_iter), (num_embeddings, embedding_dim),
                            jnp.float32) * 0.1
    emb = emb.at[pad_idx].set(0.0)        # nn.Embedding(padding_idx=pad_idx)

    linears = []
    in_dim = embedding_dim
    for _ in range(num_layers):
        w = jax.random.normal(next(k_iter), (in_dim, hidden_size),
                              jnp.float32) * (1.0 / jnp.sqrt(in_dim))
        b = jax.random.normal(next(k_iter), (1, hidden_size), jnp.float32) * 0.01
        linears.append((w, b))
        in_dim = hidden_size

    w_out = jax.random.normal(next(k_iter), (hidden_size, num_outs),
                              jnp.float32) * (1.0 / jnp.sqrt(hidden_size))
    b_out = jax.random.normal(next(k_iter), (1, num_outs), jnp.float32) * 0.01

    return {"emb": emb, "linears": linears, "w_out": w_out, "b_out": b_out}


def pack_params_for_kernel(params):
    """Zero-pad all dims to a common 128-lane multiple, stack weights/biases.

    Returns (emb_bf16 (Vp,Dp), w_stack_bf16 (L+1,Dp,Dp), b_stack_f32 (L+1,1,Dp)).
    Zero padding is numerically exact: padded input lanes stay 0 through
    relu(0*w + 0) = 0 and padded output lanes are sliced away in the wrapper.
    """
    V, E = params["emb"].shape
    H = params["linears"][0][0].shape[1]
    O = params["w_out"].shape[1]
    Vp = _round_up(V, LANE)
    Dp = _round_up(max(E, H, O), LANE)

    emb_p = _pad2(params["emb"], Vp, Dp).astype(jnp.bfloat16)

    w_list, b_list = [], []
    for w, b in params["linears"]:
        w_list.append(_pad2(w, Dp, Dp))
        b_list.append(_pad2(b, 1, Dp))
    w_list.append(_pad2(params["w_out"], Dp, Dp))
    b_list.append(_pad2(params["b_out"], 1, Dp))

    w_stack = jnp.stack(w_list, axis=0).astype(jnp.bfloat16)   # (L+1, Dp, Dp)
    b_stack = jnp.stack(b_list, axis=0).astype(jnp.float32)    # (L+1, 1, Dp)
    return emb_p, w_stack, b_stack


@functools.partial(jax.jit, static_argnames=("num_layers", "num_outs"))
def cbow_forward(in_sequence, seq_len, emb_p, w_stack, b_stack, *,
                 num_layers, num_outs):
    """in_sequence: (B, S) int32 token ids; seq_len: (B, 1) f32 lengths."""
    batch = in_sequence.shape[0]
    out_pad = w_stack.shape[-1]                       # lane-dense (multiple of 128)

    vmem_spec = pl.BlockSpec(memory_space=pltpu.MemorySpace.VMEM)
    out = pl.pallas_call(
        make_cbow_kernel(num_layers),
        out_shape=jax.ShapeDtypeStruct((batch, out_pad), jnp.float32),
        in_specs=[vmem_spec] * 5,
        out_specs=vmem_spec,
    )(in_sequence.astype(jnp.int32), seq_len.astype(jnp.float32),
      emb_p, w_stack, b_stack)
    return out[:, :num_outs]


def cbow_reference(in_sequence, seq_len, params):
    """Pure-JAX f32 reference of the PyTorch forward (eval mode)."""
    x = jnp.take(params["emb"], in_sequence, axis=0).sum(axis=1) / seq_len
    x = jnp.maximum(x, 0.0)
    for w, b in params["linears"]:
        x = jnp.maximum(x @ w + b, 0.0)
    return x @ params["w_out"] + params["b_out"]


if __name__ == "__main__":
    # Small, module-consistent shapes.
    B, S = 8, 8
    EMBEDDING_DIM = 32
    NUM_EMBEDDINGS = 50
    HIDDEN_SIZE = 64
    NUM_OUTS = 4
    NUM_LAYERS = 2
    PAD_IDX = 0

    root = jax.random.PRNGKey(0)
    k_params, k_tok, k_len = jax.random.split(root, 3)

    params = init_params(
        k_params,
        embedding_dim=EMBEDDING_DIM,
        num_embeddings=NUM_EMBEDDINGS,
        hidden_size=HIDDEN_SIZE,
        num_outs=NUM_OUTS,
        num_layers=NUM_LAYERS,
        pad_idx=PAD_IDX,
    )
    emb_p, w_stack, b_stack = pack_params_for_kernel(params)

    # Deterministic token ids (pad id kept for padded positions) and lengths.
    tokens = jax.random.randint(k_tok, (B, S), 1, NUM_EMBEDDINGS, dtype=jnp.int32)
    lens = jax.random.randint(k_len, (B,), 3, S + 1, dtype=jnp.int32)
    pos = jnp.arange(S)[None, :]
    tokens = jnp.where(pos < lens[:, None], tokens, PAD_IDX)
    seq_len = lens.astype(jnp.float32).reshape(B, 1)

    # The counts@table trick requires all ids in [0, num_embeddings).
    assert int(tokens.min()) >= 0 and int(tokens.max()) < NUM_EMBEDDINGS

    scores = cbow_forward(tokens, seq_len, emb_p, w_stack, b_stack,
                          num_layers=NUM_LAYERS, num_outs=NUM_OUTS)
    scores = jax.block_until_ready(scores)

    ref = cbow_reference(tokens, seq_len, params)
    assert scores.shape == (B, NUM_OUTS)
    # Tolerance relaxed vs. the f32 reference because matmul operands
    # (embedding table + weights) are bf16 and 1/seq_len uses the approximate
    # EUP reciprocal; accumulation stays f32 so errors remain small.
    assert jnp.allclose(scores, ref, atol=2e-2, rtol=2e-2), "mismatch vs reference"

    print("KERNEL_OK")
</pallas_src>

<mosaic_0001>
module attributes {stable_mosaic.version = 11 : i64} {
  func.func @kernel(%arg0: memref<8x8xi32, #tpu.memory_space<vmem>>, %arg1: memref<8x1xf32, #tpu.memory_space<vmem>>, %arg2: memref<128x128xbf16, #tpu.memory_space<vmem>>, %arg3: memref<3x128x128xbf16, #tpu.memory_space<vmem>>, %arg4: memref<3x1x128xf32, #tpu.memory_space<vmem>>, %arg5: memref<8x128xf32, #tpu.memory_space<vmem>>) attributes {dimension_semantics = [], scalar_prefetch = 0 : i64, scratch_operands = 0 : i64, tpu.core_type = #tpu.core_type<tc>} {
    %c0 = arith.constant 0 : index
    %c0_0 = arith.constant 0 : index
    %0 = vector.load %arg0[%c0, %c0_0] : memref<8x8xi32, #tpu.memory_space<vmem>>, vector<8x8xi32>
    %1 = tpu.iota {dimensions = array<i32: 1>} : vector<1x128xi32>
    %c0_i32 = arith.constant 0 : i32
    %2 = vector.broadcast %c0_i32 : i32 to vector<8x128xi32>
    %3 = vector.extract_strided_slice %0 {offsets = [0, 0], sizes = [8, 1], strides = [1, 1]} : vector<8x8xi32> to vector<8x1xi32>
    %4 = vector.broadcast %3 : vector<8x1xi32> to vector<8x128xi32>
    %5 = vector.broadcast %1 : vector<1x128xi32> to vector<8x128xi32>
    %6 = arith.cmpi eq, %4, %5 : vector<8x128xi32>
    %7 = arith.extui %6 : vector<8x128xi1> to vector<8x128xi32>
    %8 = arith.addi %2, %7 : vector<8x128xi32>
    %9 = vector.extract_strided_slice %0 {offsets = [0, 1], sizes = [8, 1], strides = [1, 1]} : vector<8x8xi32> to vector<8x1xi32>
    %10 = vector.broadcast %9 : vector<8x1xi32> to vector<8x128xi32>
    %11 = vector.broadcast %1 : vector<1x128xi32> to vector<8x128xi32>
    %12 = arith.cmpi eq, %10, %11 : vector<8x128xi32>
    %13 = arith.extui %12 : vector<8x128xi1> to vector<8x128xi32>
    %14 = arith.addi %8, %13 : vector<8x128xi32>
    %15 = vector.extract_strided_slice %0 {offsets = [0, 2], sizes = [8, 1], strides = [1, 1]} : vector<8x8xi32> to vector<8x1xi32>
    %16 = vector.broadcast %15 : vector<8x1xi32> to vector<8x128xi32>
    %17 = vector.broadcast %1 : vector<1x128xi32> to vector<8x128xi32>
    %18 = arith.cmpi eq, %16, %17 : vector<8x128xi32>
    %19 = arith.extui %18 : vector<8x128xi1> to vector<8x128xi32>
    %20 = arith.addi %14, %19 : vector<8x128xi32>
    %21 = vector.extract_strided_slice %0 {offsets = [0, 3], sizes = [8, 1], strides = [1, 1]} : vector<8x8xi32> to vector<8x1xi32>
    %22 = vector.broadcast %21 : vector<8x1xi32> to vector<8x128xi32>
    %23 = vector.broadcast %1 : vector<1x128xi32> to vector<8x128xi32>
    %24 = arith.cmpi eq, %22, %23 : vector<8x128xi32>
    %25 = arith.extui %24 : vector<8x128xi1> to vector<8x128xi32>
    %26 = arith.addi %20, %25 : vector<8x128xi32>
    %27 = vector.extract_strided_slice %0 {offsets = [0, 4], sizes = [8, 1], strides = [1, 1]} : vector<8x8xi32> to vector<8x1xi32>
    %28 = vector.broadcast %27 : vector<8x1xi32> to vector<8x128xi32>
    %29 = vector.broadcast %1 : vector<1x128xi32> to vector<8x128xi32>
    %30 = arith.cmpi eq, %28, %29 : vector<8x128xi32>
    %31 = arith.extui %30 : vector<8x128xi1> to vector<8x128xi32>
    %32 = arith.addi %26, %31 : vector<8x128xi32>
    %33 = vector.extract_strided_slice %0 {offsets = [0, 5], sizes = [8, 1], strides = [1, 1]} : vector<8x8xi32> to vector<8x1xi32>
    %34 = vector.broadcast %33 : vector<8x1xi32> to vector<8x128xi32>
    %35 = vector.broadcast %1 : vector<1x128xi32> to vector<8x128xi32>
    %36 = arith.cmpi eq, %34, %35 : vector<8x128xi32>
    %37 = arith.extui %36 : vector<8x128xi1> to vector<8x128xi32>
    %38 = arith.addi %32, %37 : vector<8x128xi32>
    %39 = vector.extract_strided_slice %0 {offsets = [0, 6], sizes = [8, 1], strides = [1, 1]} : vector<8x8xi32> to vector<8x1xi32>
    %40 = vector.broadcast %39 : vector<8x1xi32> to vector<8x128xi32>
    %41 = vector.broadcast %1 : vector<1x128xi32> to vector<8x128xi32>
    %42 = arith.cmpi eq, %40, %41 : vector<8x128xi32>
    %43 = arith.extui %42 : vector<8x128xi1> to vector<8x128xi32>
    %44 = arith.addi %38, %43 : vector<8x128xi32>
    %45 = vector.extract_strided_slice %0 {offsets = [0, 7], sizes = [8, 1], strides = [1, 1]} : vector<8x8xi32> to vector<8x1xi32>
    %46 = vector.broadcast %45 : vector<8x1xi32> to vector<8x128xi32>
    %47 = vector.broadcast %1 : vector<1x128xi32> to vector<8x128xi32>
    %48 = arith.cmpi eq, %46, %47 : vector<8x128xi32>
    %49 = arith.extui %48 : vector<8x128xi1> to vector<8x128xi32>
    %50 = arith.addi %44, %49 : vector<8x128xi32>
    %51 = arith.sitofp %50 : vector<8x128xi32> to vector<8x128xbf16>
    %c0_1 = arith.constant 0 : index
    %c0_2 = arith.constant 0 : index
    %52 = vector.load %arg2[%c0_1, %c0_2] : memref<128x128xbf16, #tpu.memory_space<vmem>>, vector<128x128xbf16>
    %cst = arith.constant dense<0.000000e+00> : vector<8x128xf32>
    %53 = tpu.matmul %51, %52, %cst {dimension_numbers = #tpu.dot_dimension_numbers<[1], [0], [0], [1], [0, 0, 1, 1], [], []>} : vector<8x128xbf16>, vector<128x128xbf16>, vector<8x128xf32> -> vector<8x128xf32>
    %c0_3 = arith.constant 0 : index
    %c0_4 = arith.constant 0 : index
    %54 = vector.load %arg1[%c0_3, %c0_4] : memref<8x1xf32, #tpu.memory_space<vmem>>, vector<8x1xf32>
    %55 = tpu.reciprocal %54 {approx = true} : vector<8x1xf32> -> vector<8x1xf32>
    %56 = vector.broadcast %55 : vector<8x1xf32> to vector<8x128xf32>
    %57 = arith.mulf %53, %56 : vector<8x128xf32>
    %cst_5 = arith.constant 0.000000e+00 : f32
    %58 = vector.broadcast %cst_5 : f32 to vector<8x128xf32>
    %59 = arith.maximumf %57, %58 : vector<8x128xf32>
    %c0_6 = arith.constant 0 : index
    %c0_7 = arith.constant 0 : index
    %c0_8 = arith.constant 0 : index
    %60 = vector.load %arg3[%c0_6, %c0_7, %c0_8] : memref<3x128x128xbf16, #tpu.memory_space<vmem>>, vector<1x128x128xbf16>
    %61 = vector.shape_cast %60 : vector<1x128x128xbf16> to vector<128x128xbf16>
    %c0_9 = arith.constant 0 : index
    %c0_10 = arith.constant 0 : index
    %c0_11 = arith.constant 0 : index
    %62 = vector.load %arg4[%c0_9, %c0_10, %c0_11] : memref<3x1x128xf32, #tpu.memory_space<vmem>>, vector<1x1x128xf32>
    %63 = vector.shape_cast %62 : vector<1x1x128xf32> to vector<1x128xf32>
    %64 = arith.truncf %59 : vector<8x128xf32> to vector<8x128xbf16>
    %cst_12 = arith.constant dense<0.000000e+00> : vector<8x128xf32>
    %65 = tpu.matmul %64, %61, %cst_12 {dimension_numbers = #tpu.dot_dimension_numbers<[1], [0], [0], [1], [0, 0, 1, 1], [], []>} : vector<8x128xbf16>, vector<128x128xbf16>, vector<8x128xf32> -> vector<8x128xf32>
    %66 = vector.broadcast %63 : vector<1x128xf32> to vector<8x128xf32>
    %67 = arith.addf %65, %66 : vector<8x128xf32>
    %cst_13 = arith.constant 0.000000e+00 : f32
    %68 = vector.broadcast %cst_13 : f32 to vector<8x128xf32>
    %69 = arith.maximumf %67, %68 : vector<8x128xf32>
    %c1 = arith.constant 1 : index
    %c0_14 = arith.constant 0 : index
    %c0_15 = arith.constant 0 : index
    %70 = vector.load %arg3[%c1, %c0_14, %c0_15] : memref<3x128x128xbf16, #tpu.memory_space<vmem>>, vector<1x128x128xbf16>
    %71 = vector.shape_cast %70 : vector<1x128x128xbf16> to vector<128x128xbf16>
    %c1_16 = arith.constant 1 : index
    %c0_17 = arith.constant 0 : index
    %c0_18 = arith.constant 0 : index
    %72 = vector.load %arg4[%c1_16, %c0_17, %c0_18] : memref<3x1x128xf32, #tpu.memory_space<vmem>>, vector<1x1x128xf32>
    %73 = vector.shape_cast %72 : vector<1x1x128xf32> to vector<1x128xf32>
    %74 = arith.truncf %69 : vector<8x128xf32> to vector<8x128xbf16>
    %cst_19 = arith.constant dense<0.000000e+00> : vector<8x128xf32>
    %75 = tpu.matmul %74, %71, %cst_19 {dimension_numbers = #tpu.dot_dimension_numbers<[1], [0], [0], [1], [0, 0, 1, 1], [], []>} : vector<8x128xbf16>, vector<128x128xbf16>, vector<8x128xf32> -> vector<8x128xf32>
    %76 = vector.broadcast %73 : vector<1x128xf32> to vector<8x128xf32>
    %77 = arith.addf %75, %76 : vector<8x128xf32>
    %cst_20 = arith.constant 0.000000e+00 : f32
    %78 = vector.broadcast %cst_20 : f32 to vector<8x128xf32>
    %79 = arith.maximumf %77, %78 : vector<8x128xf32>
    %c2 = arith.constant 2 : index
    %c0_21 = arith.constant 0 : index
    %c0_22 = arith.constant 0 : index
    %80 = vector.load %arg3[%c2, %c0_21, %c0_22] : memref<3x128x128xbf16, #tpu.memory_space<vmem>>, vector<1x128x128xbf16>
    %81 = vector.shape_cast %80 : vector<1x128x128xbf16> to vector<128x128xbf16>
    %c2_23 = arith.constant 2 : index
    %c0_24 = arith.constant 0 : index
    %c0_25 = arith.constant 0 : index
    %82 = vector.load %arg4[%c2_23, %c0_24, %c0_25] : memref<3x1x128xf32, #tpu.memory_space<vmem>>, vector<1x1x128xf32>
    %83 = vector.shape_cast %82 : vector<1x1x128xf32> to vector<1x128xf32>
    %84 = arith.truncf %79 : vector<8x128xf32> to vector<8x128xbf16>
    %cst_26 = arith.constant dense<0.000000e+00> : vector<8x128xf32>
    %85 = tpu.matmul %84, %81, %cst_26 {dimension_numbers = #tpu.dot_dimension_numbers<[1], [0], [0], [1], [0, 0, 1, 1], [], []>} : vector<8x128xbf16>, vector<128x128xbf16>, vector<8x128xf32> -> vector<8x128xf32>
    %86 = vector.broadcast %83 : vector<1x128xf32> to vector<8x128xf32>
    %87 = arith.addf %85, %86 : vector<8x128xf32>
    %c0_27 = arith.constant 0 : index
    %c0_28 = arith.constant 0 : index
    %88 = vector.load %arg5[%c0_27, %c0_28] : memref<8x128xf32, #tpu.memory_space<vmem>>, vector<8x128xf32>
    tpu.vector_store %arg5[%c0_27, %c0_28], %87 {strides = array<i32>} : memref<8x128xf32, #tpu.memory_space<vmem>>, vector<8x128xf32>,
    return
  }
}

</mosaic_0001>

<bundles_post_ra>
// kernel: cbow_forward.1
= control target key start
LH: loop header
LB: loop body
LE: loop exit
PB: predicated region body
PF: predicated region fallthrough
CT: control target
= control target key end

     0   :  { %10 = vsyncpa [#allocation3], 0  ;;  %s765_s0 = inlined_call_operand.vmem [shape: s32[8,8], index: 0, kind: input, shape index: {}]   ;;  %s766_s1 = inlined_call_operand.vmem [shape: f32[8,1], index: 1, kind: input, shape index: {}]   ;;  %s767_s2 = inlined_call_operand.hbm [shape: bf16[128,128], index: 2, kind: input, shape index: {}]   ;;  %s768_s3 = inlined_call_operand.hbm [shape: bf16[3,128,128], index: 3, kind: input, shape index: {}]   ;;  %s769_s4 = inlined_call_operand.vmem [shape: f32[3,1,128], index: 4, kind: input, shape index: {}]   ;;  %s770_s5 = inlined_call_operand.vmem [shape: f32[8,128], index: 5, kind: output, shape index: {}]  }
   0x1   :  { %s20_s20 = sshll.u32 %s767_s2, 4  ;;  %s21_s20 = int_to_ptr.hbm [resolvable:$true] %s20_s20 }
   0x2   :  { %11 = vsyncpa [#allocation5], 0  ;;  %s689_s21 = smov [#allocation2]   ;;  %s33_s25 = sshll.u32 %s768_s3, 4  ;;  %s34_s25 = int_to_ptr.hbm [resolvable:$true] %s33_s25 }
   0x3   :  { %s22_s22 = sshll.u32 %s689_s21, 4  ;;  %s690_s26 = smov 64   ;;  %s23_s22 = int_to_ptr.vmem [resolvable:$true] %s22_s22 }
   0x4   :  { %s691_s27 = smov 4   ;;  %s692_s28 = smov [#allocation4]  }
   0x5   :  { %28 = dma.hbm_to_vmem [thread:$0]  %s21_s20, 1024, %s23_s22, [#allocation3], %s690_s26, %s690_s26, %s691_s27  }
   0x6   :  { %s35_s29 = sshll.u32 %s692_s28, 4  ;;  %s36_s29 = int_to_ptr.vmem [resolvable:$true] %s35_s29 }
   0x7   :  { %41 = dma.hbm_to_vmem [thread:$0]  %s34_s25, 3072, %s36_s29, [#allocation5], %s690_s26, %s690_s26, %s691_s27  }
   0x8   :  { %685 = dma.done.wait [#allocation3], 1024  }
   0x9   :  { %686 = vsyncadd [#allocation3], 4294966272 }
   0xa   :  { %687 = dma.done.wait [#allocation5], 3072  }
   0xb   :  { %688 = vsyncadd [#allocation5], 4294964224  ;;  %v693_v0 = vmov 0   ;;  %v694_v1 = vmov 2   ;;  %v695_v2 = vmov 4   ;;  %v52_v3 = vld [vmem:[%s765_s0] sm:$0xff]  ;;  %v53_v20 = vlaneseq }
   0xc   :  { %623 = vset.pattern.permute.xlu0 %v693_v0  ;;  %625 = vset.pattern.permute.xlu1 %v694_v1  ;;  %v586_v4 = vld [vmem:[#allocation2 + $0x38] sm:$0xff]  ;;  %v696_v5 = vmov 1   ;;  %v697_v6 = vmov 3   ;;  %v698_v7 = vmov 5   ;;  %v699_v8 = vmov 6   ;;  %v585_v10 = vld [vmem:[#allocation2 + $0x30] sm:$0xff] }
   0xd   :  { %627 = vset.pattern.permute.xlu2 %v695_v2  ;;  %56 = vperm.xlu0 %623, %v52_v3   ;;  %v700_v9 = vmov 7   ;;  %v584_v11 = vld [vmem:[#allocation2 + $0x28] sm:$0xff]  ;;  %v583_v12 = vld [vmem:[#allocation2 + $0x20] sm:$0xff]  ;;  %v582_v13 = vld [vmem:[#allocation2 + $0x18] sm:$0xff]  ;;  %v54_v24 = vand.u32 127, %v53_v20 }
   0xe   :  { %67 = vperm.xlu1 %625, %v52_v3   ;;  %79 = vperm.xlu2 %627, %v52_v3   ;;  %v581_v14 = vld [vmem:[#allocation2 + $0x10] sm:$0xff]  ;;  %v580_v15 = vld [vmem:[#allocation2 + $0x8] sm:$0xff]  ;;  %v579_v16 = vld [vmem:[#allocation2] sm:$0xff] }
   0xf   :  { %168 = vmatpush.bf16.msra.mxu0 %v586_v4  ;;  %v181_v18 = vld [vmem:[%s766_s1] sm:$0xff]  ;;  %v594_v19 = vld [vmem:[#allocation4 + $0x38] sm:$0xff]  ;;  %v593_v23 = vld [vmem:[#allocation4 + $0x30] sm:$0xff] }
  0x10   :  { %635 = vrcp.f32 %v181_v18  ;;  %259 = vmatpush.bf16.msra.mxu1 %v594_v19  ;;  %v592_v25 = vld [vmem:[#allocation4 + $0x28] sm:$0xff]  ;;  %v591_v28 = vld [vmem:[#allocation4 + $0x20] sm:$0xff]  ;;  %v590_v34 = vld [vmem:[#allocation4 + $0x18] sm:$0xff] }
  0x11   :  { %v589_v40 = vld [vmem:[#allocation4 + $0x10] sm:$0xff]  ;;  %v588_v52 = vld [vmem:[#allocation4 + $0x8] sm:$0xff]  ;;  %v587_v53 = vld [vmem:[#allocation4] sm:$0xff] }
  0x12   :  { %v602_v54 = vld [vmem:[#allocation4 + $0x78] sm:$0xff]  ;;  %v601_v55 = vld [vmem:[#allocation4 + $0x70] sm:$0xff]  ;;  %v600_v56 = vld [vmem:[#allocation4 + $0x68] sm:$0xff] }
  0x13   :  { %169 = vmatpush.bf16.msra.mxu0 %v585_v10  ;;  %344 = vmatpush.bf16.msra.mxu2 %v602_v54  ;;  %v599_v57 = vld [vmem:[#allocation4 + $0x60] sm:$0xff]  ;;  %v598_v58 = vld [vmem:[#allocation4 + $0x58] sm:$0xff]  ;;  %v597_v59 = vld [vmem:[#allocation4 + $0x50] sm:$0xff] }
  0x14   :  { %260 = vmatpush.bf16.msra.mxu1 %v593_v23  ;;  %v596_v2 = vld [vmem:[#allocation4 + $0x48] sm:$0xff]  ;;  %v610_v4 = vld [vmem:[#allocation4 + $0xb8] sm:$0xff]  ;;  %v632_v10 = vld [vmem:[%s769_s4] ss:$0 sm:$0xff] }
  0x15   :  { %624 = vset.pattern.permute.xlu0 %v696_v5  ;;  %429 = vmatpush.bf16.msra.mxu3 %v610_v4  ;;  %v609_v5 = vld [vmem:[#allocation4 + $0xb0] sm:$0xff]  ;;  %v633_v18 = vld [vmem:[%s769_s4 + $0x1] ss:$0 sm:$0xff] }
  0x16   :  { %626 = vset.pattern.permute.xlu1 %v697_v6  ;;  %61 = vperm.xlu0 %624, %v52_v3   ;;  %v636_v26 = vpop.eup %635  ;;  %v608_v6 = vld [vmem:[#allocation4 + $0xa8] sm:$0xff] }
  0x17   :  { %73 = vperm.xlu1 %626, %v52_v3   ;;  %628 = vset.pattern.permute.xlu2 %v698_v7  ;;  %v607_v7 = vld [vmem:[#allocation4 + $0xa0] sm:$0xff] }
  0x18   :  { %85 = vperm.xlu2 %628, %v52_v3   ;;  %170 = vmatpush.bf16.msra.mxu0 %v584_v11 }
  0x19   :  { %261 = vmatpush.bf16.msra.mxu1 %v592_v25  ;;  %345 = vmatpush.bf16.msra.mxu2 %v601_v55 }
  0x1a   :  { %430 = vmatpush.bf16.msra.mxu3 %v609_v5 }
  0x1c   :  { %171 = vmatpush.bf16.msra.mxu0 %v583_v12 }
  0x1d   :  { %262 = vmatpush.bf16.msra.mxu1 %v591_v28  ;;  %346 = vmatpush.bf16.msra.mxu2 %v600_v56 }
  0x1e   :  { %631 = vset.pattern.permute.xlu0 %v693_v0  ;;  %431 = vmatpush.bf16.msra.mxu3 %v608_v6 }
  0x1f   :  { %629 = vset.pattern.permute.xlu1 %v699_v8  ;;  %185 = vperm.xlu0 %631, %v636_v26   ;;  %v606_v8 = vld [vmem:[#allocation4 + $0x98] sm:$0xff] }
  0x20   :  { %91 = vperm.xlu1 %629, %v52_v3   ;;  %630 = vset.pattern.permute.xlu2 %v700_v9  ;;  %v605_v9 = vld [vmem:[#allocation4 + $0x90] sm:$0xff] }
  0x21   :  { %97 = vperm.xlu2 %630, %v52_v3   ;;  %172 = vmatpush.bf16.msra.mxu0 %v582_v13  ;;  %v595_v3 = vld [vmem:[#allocation4 + $0x40] sm:$0xff] }
  0x22   :  { %263 = vmatpush.bf16.msra.mxu1 %v590_v34  ;;  %347 = vmatpush.bf16.msra.mxu2 %v599_v57 }
  0x23   :  { %432 = vmatpush.bf16.msra.mxu3 %v607_v7 }
  0x25   :  { %173 = vmatpush.bf16.msra.mxu0 %v581_v14 }
  0x26   :  { %264 = vmatpush.bf16.msra.mxu1 %v589_v40  ;;  %348 = vmatpush.bf16.msra.mxu2 %v598_v58 }
  0x27   :  { %433 = vmatpush.bf16.msra.mxu3 %v606_v8 }
  0x29   :  { %174 = vmatpush.bf16.msra.mxu0 %v580_v15 }
  0x2a   :  { %265 = vmatpush.bf16.msra.mxu1 %v588_v52  ;;  %349 = vmatpush.bf16.msra.mxu2 %v597_v59 }
  0x2b   :  { %434 = vmatpush.bf16.msra.mxu3 %v605_v9 }
  0x2d   :  { %175 = vmatpush.bf16.msra.mxu0 %v579_v16  ;;  %v604_v16 = vld [vmem:[#allocation4 + $0x88] sm:$0xff] }
  0x2e   :  { %266 = vmatpush.bf16.msra.mxu1 %v587_v53  ;;  %350 = vmatpush.bf16.msra.mxu2 %v596_v2 }
  0x2f   :  { %435 = vmatpush.bf16.msra.mxu3 %v604_v16 }
  0x32   :  { %351 = vmatpush.bf16.msra.mxu2 %v595_v3 }
  0x68   :  { %v80_v17 = vpop.permute.xlu2 %79 }
  0x69   :  { %vm81_vm4 = vcmp.eq.s32.totalorder %v80_v17, %v54_v24  ;;  %v603_v17 = vld [vmem:[#allocation4 + $0x80] sm:$0xff] }
  0x6a   :  { %v82_v41 = vsel %vm81_vm4, 1, %v693_v0  ;;  %436 = vmatpush.bf16.msra.mxu3 %v603_v17 }
  0x72   :  { %v86_v27 = vpop.permute.xlu2 %85 }
  0x73   :  { %vm87_vm5 = vcmp.eq.s32.totalorder %v86_v27, %v54_v24 }
  0x74   :  { %v88_v44 = vsel %vm87_vm5, 1, %v693_v0 }
  0x7b   :  { %v98_v38 = vpop.permute.xlu2 %97 }
  0x7c   :  { %vm99_vm6 = vcmp.eq.s32.totalorder %v98_v38, %v54_v24 }
  0x7d   :  { %v100_v47 = vsel %vm99_vm6, 1, %v693_v0 }
  0x7f   :  { %v57_v21 = vpop.permute.xlu0 %56 }
  0x80   :  { %v68_v22 = vpop.permute.xlu1 %67  ;;  %vm58_vm0 = vcmp.eq.s32.totalorder %v57_v21, %v54_v24 }
  0x81   :  { %vm69_vm1 = vcmp.eq.s32.totalorder %v68_v22, %v54_v24  ;;  %v59_v31 = vsel %vm58_vm0, 1, %v693_v0 }
  0x82   :  { %v70_v35 = vsel %vm69_vm1, 1, %v693_v0 }
  0x88   :  { %v62_v29 = vpop.permute.xlu0 %61 }
  0x89   :  { %v74_v30 = vpop.permute.xlu1 %73  ;;  %vm63_vm2 = vcmp.eq.s32.totalorder %v62_v29, %v54_v24 }
  0x8a   :  { %v64_v32 = vsel %vm63_vm2, 1, %v693_v0  ;;  %vm75_vm3 = vcmp.eq.s32.totalorder %v74_v30, %v54_v24 }
  0x8b   :  { %v65_v33 = vadd.s32 %v64_v32, %v59_v31  ;;  %v76_v37 = vsel %vm75_vm3, 1, %v693_v0 }
  0x8d   :  { %v71_v36 = vadd.s32 %v70_v35, %v65_v33 }
  0x8f   :  { %v77_v39 = vadd.s32 %v76_v37, %v71_v36 }
  0x91   :  { %v83_v42 = vadd.s32 %v82_v41, %v77_v39  ;;  %v186_v60 = vpop.permute.xlu0 %185 }
  0x92   :  { %v92_v43 = vpop.permute.xlu1 %91 }
  0x93   :  { %vm93_vm7 = vcmp.eq.s32.totalorder %v92_v43, %v54_v24  ;;  %v89_v45 = vadd.s32 %v88_v44, %v83_v42  ;;  %v634_v24 = vld [vmem:[%s769_s4 + $0x2] ss:$0 sm:$0xff] }
  0x94   :  { %v94_v46 = vsel %vm93_vm7, 1, %v693_v0 }
  0x95   :  { %v95_v48 = vadd.s32 %v94_v46, %v89_v45 }
  0x97   :  { %v101_v49 = vadd.s32 %v100_v47, %v95_v48 }
  0x99   :  { %v102_v50 = vcvt.s32.f32 %v101_v49 }
  0x9b   :  { %v103_v51 = vpack.c.bf16 %v102_v50, %v102_v50 }
  0x9d   :  { %176 = vmatmul.bf16.vlgmr.msra.gmra.mxu0 %v103_v51 }
 0x11a   :  { %v177_v61 = vpop.f32.mrf.mxu0 }
 0x11b   :  { %v188_v62 = vmul.f32 %v186_v60, %v177_v61 }
 0x11d   :  { %v189_v63 = vmax.f32 %v188_v62, 0.0 }
 0x11f   :  { %v207_v0 = vpack.c.bf16 %v189_v63, %v189_v63 }
 0x121   :  { %267 = vmatmul.bf16.vlgmr.msra.gmra.mxu1 %v207_v0 }
 0x122   :  { %v179_v1 = vpop.f32.mrf.mxu0 }
 0x19e   :  { %v268_v11 = vpop.f32.mrf.mxu1 }
 0x19f   :  { %v269_v12 = vadd.f32 %v632_v10, %v268_v11 }
 0x1a1   :  { %v272_v13 = vmax.f32 %v269_v12, 0.0 }
 0x1a3   :  { %v292_v14 = vpack.c.bf16 %v272_v13, %v272_v13 }
 0x1a5   :  { %352 = vmatmul.bf16.vlgmr.msra.gmra.mxu2 %v292_v14 }
 0x1a6   :  { %v270_v15 = vpop.f32.mrf.mxu1 }
 0x228   :  { %v353_v19 = vpop.f32.mrf.mxu2 }
 0x229   :  { %v354_v20 = vadd.f32 %v633_v18, %v353_v19 }
 0x22b   :  { %v357_v21 = vmax.f32 %v354_v20, 0.0 }
 0x22d   :  { %v377_v22 = vpack.c.bf16 %v357_v21, %v357_v21 }
 0x22f   :  { %437 = vmatmul.bf16.vlgmr.msra.gmra.mxu3 %v377_v22 }
 0x230   :  { %v355_v23 = vpop.f32.mrf.mxu2 }
 0x2b2   :  { %v438_v25 = vpop.f32.mrf.mxu3 }
 0x2b3   :  { %v439_v26 = vadd.f32 %v634_v24, %v438_v25 }
 0x2b5   :  { %442 = vst [vmem:[%s770_s5] sm:$0xff] %v439_v26 }
 0x2ba   :  { %v440_v27 = vpop.f32.mrf.mxu3 }
 0x2bb   :  { %447 = vsyncpa [#allocation3], 1 }
 0x2bc   :  { %448 = vsyncpa [#allocation5], 1 }

</bundles_post_ra>
